<compile_context>
chip_gen: v7x
topology: tpu7x:2x2x1
jax: 0.10.0
libtpu: 0.0.40
codegen_flags: <defaults>
</compile_context>

<pallas_src>
import jax
import jax.numpy as jnp
from jax.experimental import pallas as pl
from jax.experimental.pallas import tpu as pltpu


# ---------------------------------------------------------------------------
# Kernel
# ---------------------------------------------------------------------------
def _make_kernel(num_groups: int):
    def kernel(*refs):
        # refs = (x_0, ..., x_{P-1}, wt, pred, hidden); VMEM tiles.
        x_refs = refs[:num_groups]
        wt_ref = refs[num_groups]           # [D, TN]  (W^T, grid-(i)-invariant)
        pred_ref = refs[num_groups + 1]     # [TB, TN]
        hidden_ref = refs[num_groups + 2]   # [TB, TN]

        # Sum the group inputs (P is a small static int -> fully unrolled).
        s = x_refs[0][...]
        for p in range(1, num_groups):
            s = s + x_refs[p][...]

        wt = wt_ref[...]
        hidden = jnp.dot(x_refs[num_groups - 1][...], wt,
                         preferred_element_type=jnp.float32)
        pred = jnp.dot(s, wt, preferred_element_type=jnp.float32)

        pred_ref[...] = pred.astype(pred_ref.dtype)
        hidden_ref[...] = hidden.astype(hidden_ref.dtype)

    return kernel


# ---------------------------------------------------------------------------
# Tiling / VMEM budgeting
# ---------------------------------------------------------------------------
_VMEM_BUDGET = 36 * 1024 * 1024   # conservative: leaves headroom on v7x (64 MiB)


def _round_up(x: int, m: int) -> int:
    return ((x + m - 1) // m) * m


def _choose_tiles(B: int, D: int, P: int, itemsize: int):
    """Pick (TB, TN, single_buffer_w, est_bytes) under an explicit VMEM budget."""
    # Column tile of W^T / outputs: split only when the weight alone is big
    # (> 8 MiB); otherwise keep the full, lane-dense D.
    TN = D
    if D * D * itemsize > 8 * 1024 * 1024:
        for tn in (1024, 512, 256):
            if D % tn == 0:
                TN = tn
                break

    # Grid-invariant weight -> a second pipeline buffer is pure waste.  Only
    # override for weights >= 1 MiB so tiny shapes stay on the plainest path.
    single_buffer_w = (TN == D) and (D * D * itemsize >= (1 << 20))
    w_buffers = 1 if single_buffer_w else 2

    def bytes_for(tb):
        x_b = P * 2 * tb * D * itemsize            # double-buffered inputs
        o_b = 2 * 2 * tb * TN * 4                  # double-buffered f32 outputs
        w_b = w_buffers * D * TN * itemsize
        return x_b + o_b + w_b

    b8 = max(8, _round_up(B, 8))
    TB = 8
    for tb in (1024, 512, 256, 128, 64, 32, 16, 8):
        if tb > b8:
            continue
        if bytes_for(tb) <= _VMEM_BUDGET:
            TB = tb
            break

    # Keep >= 4 grid steps when the problem allows it (DMA/compute overlap,
    # v7x two-core split), without dropping below 128 rows per tile.
    while TB > 128 and pl.cdiv(b8, TB) * max(1, D // TN) < 4:
        TB //= 2

    return TB, TN, single_buffer_w, bytes_for(TB)


def _weight_spec(D: int, TN: int, single_buffer: bool) -> pl.BlockSpec:
    idx = lambda i, j: (0, j)
    if single_buffer:
        try:
            return pl.BlockSpec((D, TN), idx, pipeline_mode=pl.Buffered(1))
        except TypeError:  # older pallas without pipeline_mode kwarg
            pass
    return pl.BlockSpec((D, TN), idx)


# ---------------------------------------------------------------------------
# Wrapper
# ---------------------------------------------------------------------------
def prepare_weight(weight, dtype=jnp.float32):
    """Pre-transpose (and optionally pre-cast) the nn.Linear weight ONCE.

    Pass the result as `weight_t=` to avoid an HBM transpose pass per forward.
    """
    return jnp.asarray(weight, dtype).T


def simple_model_generator_complex_forward(other_examples, weight=None, *,
                                            weight_t=None,
                                            compute_dtype=jnp.float32):
    """other_examples: list of dicts with 'input' -> [B, D].
    weight: [D, D] in PyTorch nn.Linear layout ([out, in]); forward is x @ W^T.
    weight_t: optional cached result of prepare_weight(weight, compute_dtype)."""
    xs = [jnp.asarray(g["input"], compute_dtype) for g in other_examples]
    P = len(xs)
    B, D = xs[0].shape

    if weight_t is None:
        weight_t = prepare_weight(weight, compute_dtype)
    else:
        weight_t = jnp.asarray(weight_t, compute_dtype)

    # Fast path: with D < 128 every store is lane-masked and the MXU/vregs are
    # mostly idle; at tiny sizes pallas_call launch overhead dominates anyway.
    if D < 128 or B * D < 8 * 1024:
        s = xs[0]
        for x in xs[1:]:
            s = s + x
        wt32 = weight_t.astype(jnp.float32)
        pred = jnp.dot(s.astype(jnp.float32), wt32)
        hidden = jnp.dot(xs[-1].astype(jnp.float32), wt32)
        return {"prediction": pred, "adv_output": None, "hidden": hidden,
                "classifier_hiddens": None, "adv_hiddens": None}

    itemsize = jnp.dtype(compute_dtype).itemsize
    TB, TN, single_buffer_w, used_bytes = _choose_tiles(B, D, P, itemsize)

    # Ragged batch: zero-pad to a multiple of TB (zero rows -> zero outputs,
    # sliced off below) instead of one giant single-step tile.
    B_pad = _round_up(B, TB)
    if B_pad != B:
        pad = B_pad - B
        xs = [jnp.pad(x, ((0, pad), (0, 0))) for x in xs]

    grid = (B_pad // TB, D // TN)

    x_spec = pl.BlockSpec((TB, D), lambda i, j: (i, 0))      # resident across j
    w_spec = _weight_spec(D, TN, single_buffer_w)             # resident across i
    out_spec = pl.BlockSpec((TB, TN), lambda i, j: (i, j))

    vmem_limit = min(60 << 20, max(32 << 20, int(used_bytes * 1.5) + (4 << 20)))

    pred, hidden = pl.pallas_call(
        _make_kernel(P),
        out_shape=(
            jax.ShapeDtypeStruct((B_pad, D), jnp.float32),
            jax.ShapeDtypeStruct((B_pad, D), jnp.float32),
        ),
        grid=grid,
        in_specs=[x_spec] * P + [w_spec],
        out_specs=(out_spec, out_spec),
        compiler_params=pltpu.CompilerParams(
            dimension_semantics=("parallel", "parallel"),
            vmem_limit_bytes=vmem_limit,
        ),
    )(*xs, weight_t)

    if B_pad != B:
        pred = pred[:B]
        hidden = hidden[:B]

    # Mirror the PyTorch output dict; None-valued entries carry no tensor.
    return {"prediction": pred, "adv_output": None, "hidden": hidden,
            "classifier_hiddens": None, "adv_hiddens": None}


# ---------------------------------------------------------------------------
# Demo / self-check
# ---------------------------------------------------------------------------
if __name__ == "__main__":
    # Deterministic synthetic setup.  D=128 / B=256 is the smallest lane-dense
    # shape that exercises the Pallas path (D<128 would take the einsum path).
    number_of_params = 3
    batch, input_dim = 256, 128

    key = jax.random.PRNGKey(0)
    kw, *kxs = jax.random.split(key, number_of_params + 1)

    # nn.Linear(D, D, bias=False)-style init: U(-1/sqrt(D), 1/sqrt(D)).
    bound = 1.0 / (input_dim ** 0.5)
    weight = jax.random.uniform(kw, (input_dim, input_dim), jnp.float32,
                                minval=-bound, maxval=bound)
    other_examples = [
        {"input": jax.random.normal(k, (batch, input_dim), dtype=jnp.float32)}
        for k in kxs
    ]

    # Transpose once outside the hot loop and reuse it across forwards.
    wt_cached = prepare_weight(weight)
    out = simple_model_generator_complex_forward(other_examples, weight_t=wt_cached)
    jax.block_until_ready(out["prediction"])
    jax.block_until_ready(out["hidden"])

    # Cross-check against a plain-JAX reference (sum of per-group Linear outputs).
    ref_pred = sum(g["input"] @ weight.T for g in other_examples)
    ref_hidden = other_examples[-1]["input"] @ weight.T
    assert jnp.allclose(out["prediction"], ref_pred, atol=1e-4, rtol=1e-4), \
        "prediction mismatch"
    assert jnp.allclose(out["hidden"], ref_hidden, atol=1e-4, rtol=1e-4), \
        "hidden mismatch"

    print("KERNEL_OK")
</pallas_src>

<mosaic_0001>
module attributes {stable_mosaic.version = 11 : i64} {
  func.func @kernel(%arg0: i32, %arg1: i32, %arg2: memref<128x128xf32, #tpu.memory_space<vmem>>, %arg3: memref<128x128xf32, #tpu.memory_space<vmem>>, %arg4: memref<128x128xf32, #tpu.memory_space<vmem>>, %arg5: memref<128x128xf32, #tpu.memory_space<vmem>>, %arg6: memref<128x128xf32, #tpu.memory_space<vmem>>, %arg7: memref<128x128xf32, #tpu.memory_space<vmem>>) attributes {dimension_semantics = [#tpu.dimension_semantics<parallel>, #tpu.dimension_semantics<parallel>], iteration_bounds = array<i64: 2, 1>, scalar_prefetch = 0 : i64, scratch_operands = 0 : i64, tpu.core_type = #tpu.core_type<tc>, window_params = [{transform_indices = @transform_0, window_bounds = array<i64: 128, 128>}, {transform_indices = @transform_1, window_bounds = array<i64: 128, 128>}, {transform_indices = @transform_2, window_bounds = array<i64: 128, 128>}, {transform_indices = @transform_3, window_bounds = array<i64: 128, 128>}, {transform_indices = @transform_4, window_bounds = array<i64: 128, 128>}, {transform_indices = @transform_5, window_bounds = array<i64: 128, 128>}]} {
    %c0 = arith.constant 0 : index
    %c0_0 = arith.constant 0 : index
    %0 = vector.load %arg2[%c0, %c0_0] : memref<128x128xf32, #tpu.memory_space<vmem>>, vector<128x128xf32>
    %c0_1 = arith.constant 0 : index
    %c0_2 = arith.constant 0 : index
    %1 = vector.load %arg3[%c0_1, %c0_2] : memref<128x128xf32, #tpu.memory_space<vmem>>, vector<128x128xf32>
    %2 = arith.addf %0, %1 : vector<128x128xf32>
    %c0_3 = arith.constant 0 : index
    %c0_4 = arith.constant 0 : index
    %3 = vector.load %arg4[%c0_3, %c0_4] : memref<128x128xf32, #tpu.memory_space<vmem>>, vector<128x128xf32>
    %4 = arith.addf %2, %3 : vector<128x128xf32>
    %c0_5 = arith.constant 0 : index
    %c0_6 = arith.constant 0 : index
    %5 = vector.load %arg5[%c0_5, %c0_6] : memref<128x128xf32, #tpu.memory_space<vmem>>, vector<128x128xf32>
    %c0_7 = arith.constant 0 : index
    %c0_8 = arith.constant 0 : index
    %6 = vector.load %arg4[%c0_7, %c0_8] : memref<128x128xf32, #tpu.memory_space<vmem>>, vector<128x128xf32>
    %cst = arith.constant dense<0.000000e+00> : vector<128x128xf32>
    %7 = tpu.matmul %6, %5, %cst {dimension_numbers = #tpu.dot_dimension_numbers<[1], [0], [0], [1], [0, 0, 1, 1], [], []>} : vector<128x128xf32>, vector<128x128xf32>, vector<128x128xf32> -> vector<128x128xf32>
    %cst_9 = arith.constant dense<0.000000e+00> : vector<128x128xf32>
    %8 = tpu.matmul %4, %5, %cst_9 {dimension_numbers = #tpu.dot_dimension_numbers<[1], [0], [0], [1], [0, 0, 1, 1], [], []>} : vector<128x128xf32>, vector<128x128xf32>, vector<128x128xf32> -> vector<128x128xf32>
    %c0_10 = arith.constant 0 : index
    %c0_11 = arith.constant 0 : index
    %9 = vector.load %arg6[%c0_10, %c0_11] : memref<128x128xf32, #tpu.memory_space<vmem>>, vector<128x128xf32>
    tpu.vector_store %arg6[%c0_10, %c0_11], %8 {strides = array<i32>} : memref<128x128xf32, #tpu.memory_space<vmem>>, vector<128x128xf32>,
    %c0_12 = arith.constant 0 : index
    %c0_13 = arith.constant 0 : index
    %10 = vector.load %arg7[%c0_12, %c0_13] : memref<128x128xf32, #tpu.memory_space<vmem>>, vector<128x128xf32>
    tpu.vector_store %arg7[%c0_12, %c0_13], %7 {strides = array<i32>} : memref<128x128xf32, #tpu.memory_space<vmem>>, vector<128x128xf32>,
    return
  }
  func.func @transform_0(%arg0: i32, %arg1: i32) -> (i32, i32) {
    %c0_i32 = arith.constant 0 : i32
    %c0_i32_0 = arith.constant 0 : i32
    return %arg0, %c0_i32 : i32, i32
  }
  func.func @transform_1(%arg0: i32, %arg1: i32) -> (i32, i32) {
    %c0_i32 = arith.constant 0 : i32
    %c0_i32_0 = arith.constant 0 : i32
    return %arg0, %c0_i32 : i32, i32
  }
  func.func @transform_2(%arg0: i32, %arg1: i32) -> (i32, i32) {
    %c0_i32 = arith.constant 0 : i32
    %c0_i32_0 = arith.constant 0 : i32
    return %arg0, %c0_i32 : i32, i32
  }
  func.func @transform_3(%arg0: i32, %arg1: i32) -> (i32, i32) {
    %c0_i32 = arith.constant 0 : i32
    %c0_i32_0 = arith.constant 0 : i32
    return %c0_i32, %arg1 : i32, i32
  }
  func.func @transform_4(%arg0: i32, %arg1: i32) -> (i32, i32) {
    %c0_i32 = arith.constant 0 : i32
    return %arg0, %arg1 : i32, i32
  }
  func.func @transform_5(%arg0: i32, %arg1: i32) -> (i32, i32) {
    %c0_i32 = arith.constant 0 : i32
    return %arg0, %arg1 : i32, i32
  }
}

</mosaic_0001>

<bundles_post_ra>
// kernel: tpu_custom_call.1
= control target key start
LH: loop header
LB: loop body
LE: loop exit
PB: predicated region body
PF: predicated region fallthrough
CT: control target
= control target key end

     0   :  { %s2099_s0 = inlined_call_operand.hbm [shape: f32[256,128], index: 0, kind: input, shape index: {}]   ;;  %s2100_s1 = inlined_call_operand.hbm [shape: f32[256,128], index: 1, kind: input, shape index: {}]   ;;  %s2101_s2 = inlined_call_operand.hbm [shape: f32[256,128], index: 2, kind: input, shape index: {}]   ;;  %s2102_s3 = inlined_call_operand.hbm [shape: f32[128,128], index: 3, kind: input, shape index: {}]   ;;  %s2103_s4 = inlined_call_operand.hbm [shape: f32[256,128], index: 4, kind: output, shape index: {0}]   ;;  %s2104_s5 = inlined_call_operand.hbm [shape: f32[256,128], index: 5, kind: output, shape index: {1}]  }
   0x1   :  { %2124 = sst [smem:[#allocation23_spill]] %s2099_s0 }
   0x2   :  { %2125 = sst [smem:[#allocation24_spill]] %s2100_s1 }
   0x3   :  { %11 = vsyncpa [#allocation3], 0 }
   0x4   :  { %13 = vsyncpa [#allocation3 + $0x1], 0 }
   0x5   :  { %14 = vsyncpa [#allocation6], 0 }
   0x6   :  { %16 = vsyncpa [#allocation6 + $0x1], 0 }
   0x7   :  { %17 = vsyncpa [#allocation9], 0 }
   0x8   :  { %18 = vsyncpa [#allocation4], 0 }
   0x9   :  { %20 = vsyncpa [#allocation4 + $0x1], 0 }
   0xa   :  { %21 = vsyncpa [#allocation12], 0 }
   0xb   :  { %23 = vsyncpa [#allocation12 + $0x1], 0  ;;  %s1649_s18 = smov 0   ;;  %s1651_s19 = smov 0  }
   0xc   :  { %s1653_s20 = smov 0   ;;  %s1655_s21 = smov 0  }
   0xd   :  { %s1657_s22 = smov 0   ;;  %s1659_s23 = smov 0  }
   0xe LB: > { %2126 = sst [smem:[#allocation18_spill]] %s1595_s20  ;;  %s41_s24 = sadd.s32 1, %s1603_s22  ;;  %s1607_s23 = sphi %s1659_s23, %s29_s23   ;;  %s1603_s22 = sphi %s1657_s22, %s2158_s22   ;;  %s1599_s21 = sphi %s1655_s21, %s2157_s21   ;;  %s1595_s20 = sphi %s1653_s20, %s2156_s20   ;;  %s1591_s19 = sphi %s1651_s19, %s2160_s19   ;;  %s1587_s18 = sphi %s1649_s18, %s2159_s18  }
   0xf   : > { %2127 = sst [smem:[#allocation19_spill]] %s1603_s22  ;;  %s48_s25 = sadd.s32 1, %s1595_s20 }
  0x10   : > { %2128 = sst [smem:[#allocation20_spill]] %s1607_s23  ;;  %p43_p0 = scmp.ge.s32.totalorder %s41_s24, 2 }
  0x11   : > { %p2105_p1 = scmp.ne.s32.totalorder %s1595_s20, %s1591_s19  ;;  %p56_p2 = scmp.eq.s32.totalorder %s1607_s23, 0 }
  0x12   : > { %s2162_s24 = smov (%p43_p0, %s41_s24), 0  ;;  %p1311_p6 = scmp.lt.s32.totalorder %s1607_s23, 2 }
  0x13   : > { %2129 = sst [smem:[#allocation21_spill]] %s2162_s24  ;;  %p57_p3 = por %p56_p2, %p2105_p1 }
  0x14   : > { %s45_s26 = ssub.s32 %s1603_s22, %s2162_s24  ;;  %s2110_s27 = sand.u32 1, %s1595_s20  }
  0x15   : > { %p46_p5 = scmp.eq.s32.totalorder %s45_s26, 0  ;;  %s1695_s28 = sshll.u32 %s1603_s22, 11 }
  0x16   : > { %s1702_s30 = sshll.u32 %s2110_s27, 7  ;;  %p1704_p7 = pnand %p1311_p6, %p57_p3 }
  0x17   : > { %s1698_s29 = scalar_select %p46_p5, %s1595_s20, %s48_s25  }
  0x18   : > { %s2131_s6 = scalar_select %p1704_p7, 1, 0 }
  0x19   : > { %2130 = sst [smem:[#allocation22_spill]] %s1698_s29  ;;  %s255_s7 = sand.u32 1, %s1607_s23  }
  0x1a   : > { %s2132_s1 = sld [smem:[#allocation24_spill]]  ;;  %s259_s11 = scalar_lea.vmem [#allocation5], %s1702_s30 }
  0x1b   : > { %s266_s12 = sshll.u32 %s259_s11, 4  ;;  %s1718_s13 = scalar_lea.sflag [#allocation6], %s255_s7  ;;  %s1716_s12 = int_to_ptr.vmem [resolvable:$true] %s266_s12 }
  0x1c   : > { %p1724_p9 = pneg %p1704_p7 }
  0x1e   : > { %s2133_s15 = scalar_select %p1724_p9, 1, 0 }
  0x20   : > { %s1713_s10 = scalar_lea.hbm %s2132_s1, %s1695_s28  ;;  %s1372_s25 = scalar_lea.hbm %s2132_s1, 4096 }
  0x21   : > { %s1367_s14 = scalar_lea.hbm %s1713_s10, 2048  ;;  %p1373_p12 = scmp.lt.u32.totalorder %s1713_s10, %s2132_s1 }
  0x22   : > { %p1368_p8 = scmp.ne.s32.totalorder %s1713_s10, %s1367_s14  ;;  %p1374_p13 = scmp.lt.u32.totalorder %s1372_s25, %s1367_s14 }
  0x23   : > { %p1376_p2 = scmp.lt.u32.totalorder %s1367_s14, %s1713_s10 }
  0x24   : > { %p1370_p10 = pnand %p1724_p9, %p1368_p8  ;;  %p1375_p0 = por %p1374_p13, %p1373_p12 }
  0x26   : > { %p1371_p11 = pneg %p1370_p10  ;;  %p1377_p3 = por %p1376_p2, %p1375_p0 }
  0x28   : > { %p1378_p5 = pnand %p1377_p3, %p1371_p11 }
  0x2a   : > { %1381 = shalt.err (!%p1378_p5)
}
  0x2b   : > { %s1382_s7 = scalar_lea.vmem %s1716_s12, 2048  ;;  %s1609_s9 = smov [#allocation5]  }
  0x2c   : > { %p1383_p6 = scmp.ne.s32.totalorder %s1716_s12, %s1382_s7  ;;  %s1387_s11 = sshll.u32 %s1609_s9, 4  ;;  %s1388_s11 = int_to_ptr.vmem [resolvable:$false] %s1387_s11 }
  0x2d   : > { %s1389_s16 = scalar_lea.vmem %s1388_s11, 4096  ;;  %p1390_p4 = scmp.lt.s32.totalorder %s1716_s12, %s1388_s11 }
  0x2e   : > { %p1385_p8 = pnand %p1383_p6, %p1724_p9  ;;  %p1391_p1 = scmp.lt.s32.totalorder %s1389_s16, %s1382_s7 }
  0x30   : > { %p1386_p10 = pneg %p1385_p8  ;;  %p1392_p12 = por %p1391_p1, %p1390_p4 }
  0x32   : > { %p1393_p13 = pnand %p1392_p12, %p1386_p10 }
  0x34   : > { %1396 = shalt.err (!%p1393_p13)
}
  0x35   : > { %s2106_s14 = smov 128   ;;  %s2108_s17 = smov 8  }
  0x36   : > { %1299 = dma.hbm_to_vmem [thread:$0]  (!%p1704_p7), %s1713_s10, 2048, %s1716_s12, %s1718_s13, %s2106_s14, %s2106_s14, %s2108_s17  }
  0x37   : > { %s1752_s25 = sadd.s32 4294967295, %s1607_s23   ;;  %s1002_s26 = sadd.s32 4294967294, %s1607_s23  }
  0x38   : > { %p61_p1 = scmp.ne.s32.totalorder %s1591_s19, %s1587_s18  ;;  %p2115_p4 = scmp.eq.s32.totalorder %s1752_s25, 0 }
  0x39   : > { %p165_p11 = scmp.eq.s32.totalorder %s1752_s25, 1  ;;  %p171_p0 = scmp.eq.s32.totalorder %s1002_s26, 1 }
  0x3a   : > { %p1003_p2 = scmp.ge.s32.totalorder %s1607_s23, 1  ;;  %p1762_p3 = por %p2115_p4, %p61_p1 }
  0x3b   : > { %p2135_p5 = scmp.ne.s32.totalorder %s1595_s20, %s1591_s19  ;;  %p1773_p8 = por %p171_p0, %p61_p1 }
  0x3c   : > { %s2134_s8 = scalar_select %p1762_p3, 1, 0 }
  0x3d   : > { %p1769_p6 = por %p165_p11, %p2135_p5  ;;  %p206_p10 = scmp.lt.s32.totalorder %s1607_s23, 3 }
  0x3e   : > { %s2137_s12 = scalar_select %p1773_p8, 1, 0 }
  0x3f   : > { %s2136_s10 = scalar_select %p1769_p6, 1, 0 }
  0x40   : > { %p1778_p12 = pnand %p1003_p2, %p206_p10  ;;  %s1612_s9 = smov [#allocation8]  }
  0x41   : > { %s220_s11 = sshll.u32 %s1612_s9, 4  ;;  %s2139_s0 = sld [smem:[#allocation23_spill]]  ;;  %s1782_s11 = int_to_ptr.vmem [resolvable:$true] %s220_s11 }
  0x42   : > { %s2138_s7 = scalar_select %p1778_p12, 1, 0 }
  0x43   : > { %p1289_p13 = pneg %p1778_p12  ;;  %s238_s17 = scalar_lea.vmem [#allocation2], %s1702_s30 }
  0x44   : > { %s245_s27 = sshll.u32 %s238_s17, 4  ;;  %s2141_s9 = sand.u32 1, %s1595_s20   ;;  %s1799_s27 = int_to_ptr.vmem [resolvable:$true] %s245_s27 }
  0x45   : > { %p1795_p1 = pnand %p1289_p13, %p2115_p4  ;;  %s1803_s24 = scalar_lea.sflag [#allocation3], %s2141_s9 }
  0x47   : > { %s1790_s14 = scalar_lea.hbm %s2139_s0, %s1695_s28  ;;  %s1402_s29 = scalar_lea.hbm %s2139_s0, 4096 }
  0x48   : > { %s2140_s1 = scalar_select %p1795_p1, 1, 0 }
  0x49   : > { %s1397_s22 = scalar_lea.hbm %s1790_s14, 2048  ;;  %p1403_p5 = scmp.lt.u32.totalorder %s1790_s14, %s2139_s0 }
  0x4a   : > { %p1398_p11 = scmp.ne.s32.totalorder %s1790_s14, %s1397_s22  ;;  %p1404_p10 = scmp.lt.u32.totalorder %s1402_s29, %s1397_s22 }
  0x4b   : > { %p1406_p4 = scmp.lt.u32.totalorder %s1397_s22, %s1790_s14 }
  0x4c   : > { %p1400_p0 = pnand %p1398_p11, %p1724_p9  ;;  %p1405_p13 = por %p1404_p10, %p1403_p5 }
  0x4e   : > { %p1401_p2 = pneg %p1400_p0  ;;  %p1407_p8 = por %p1406_p4, %p1405_p13 }
  0x50   : > { %p1408_p6 = pnand %p1407_p8, %p1401_p2 }
  0x52   : > { %1411 = shalt.err (!%p1408_p6)
}
  0x53   : > { %s1412_s9 = scalar_lea.vmem %s1799_s27, 2048  ;;  %s1613_s16 = smov [#allocation2]  }
  0x54   : > { %p1413_p11 = scmp.ne.s32.totalorder %s1799_s27, %s1412_s9  ;;  %s1417_s26 = sshll.u32 %s1613_s16, 4  ;;  %s1418_s26 = int_to_ptr.vmem [resolvable:$false] %s1417_s26 }
  0x55   : > { %s1419_s23 = scalar_lea.vmem %s1418_s26, 4096  ;;  %p1420_p12 = scmp.lt.s32.totalorder %s1799_s27, %s1418_s26 }
  0x56   : > { %p1415_p0 = pnand %p1413_p11, %p1724_p9  ;;  %p1421_p1 = scmp.lt.s32.totalorder %s1419_s23, %s1412_s9 }
  0x58   : > { %p1416_p3 = pneg %p1415_p0  ;;  %p1422_p5 = por %p1421_p1, %p1420_p12 }
  0x5a   : > { %p1423_p10 = pnand %p1422_p5, %p1416_p3 }
  0x5c   : > { %1426 = shalt.err (!%p1423_p10)
}
  0x5d   : > { %s2142_s22 = smov 8   ;;  %s2143_s29 = smov 128  }
  0x5e   : > { %1296 = dma.hbm_to_vmem [thread:$0]  (!%p1704_p7), %s1790_s14, 2048, %s1799_s27, %s1803_s24, %s2143_s29, %s2143_s29, %s2142_s22  }
  0x5f   : > { %s1427_s16 = scalar_lea.hbm %s2102_s3, 2048  ;;  %p2144_p3 = scmp.ne.s32.totalorder %s2140_s1, 0 }
  0x60   : > { %p1428_p4 = scmp.ne.s32.totalorder %s2102_s3, %s1427_s16  ;;  %p1434_p1 = scmp.lt.u32.totalorder %s1427_s16, %s2102_s3 }
  0x61   : > { %p1429_p6 = pneg %p2144_p3 }
  0x63   : > { %p1430_p8 = pnand %p1429_p6, %p1428_p4 }
  0x65   : > { %p1431_p12 = pneg %p1430_p8 }
  0x67   : > { %p1436_p2 = pnand %p1434_p1, %p1431_p12 }
  0x69   : > { %1439 = shalt.err (!%p1436_p2)
}
  0x6a   : > { %s1440_s24 = scalar_lea.vmem %s1782_s11, 2048  ;;  %p1448_p5 = scmp.lt.s32.totalorder %s1782_s11, %s1782_s11 }
  0x6b   : > { %p1441_p13 = scmp.ne.s32.totalorder %s1782_s11, %s1440_s24  ;;  %p1449_p10 = scmp.lt.s32.totalorder %s1440_s24, %s1440_s24 }
  0x6d   : > { %p1443_p11 = pnand %p1441_p13, %p1429_p6  ;;  %p1450_p7 = por %p1449_p10, %p1448_p5 }
  0x6f   : > { %p1444_p0 = pneg %p1443_p11 }
  0x71   : > { %p1451_p9 = pnand %p1450_p7, %p1444_p0 }
  0x73   : > { %1454 = shalt.err (!%p1451_p9)
}
  0x74   : > { %1292 = dma.hbm_to_vmem [thread:$0]  (!%p2144_p3), %s2102_s3, 2048, %s1782_s11, [#allocation9], %s2143_s29, %s2143_s29, %s2142_s22  }
  0x75   : > { %s1858_s17 = scalar_lea.hbm %s2101_s2, %s1695_s28  ;;  %s280_s1 = scalar_lea.vmem [#allocation7], %s1702_s30 }
  0x76   : > { %s287_s16 = sshll.u32 %s280_s1, 4  ;;  %s1455_s26 = scalar_lea.hbm %s1858_s17, 2048  ;;  %s1861_s16 = int_to_ptr.vmem [resolvable:$true] %s287_s16 }
  0x77   : > { %p1456_p7 = scmp.ne.s32.totalorder %s1858_s17, %s1455_s26  ;;  %p2145_p9 = scmp.ne.s32.totalorder %s2133_s15, 0 }
  0x78   : > { %s1460_s23 = scalar_lea.hbm %s2101_s2, 4096  ;;  %p1461_p3 = scmp.lt.u32.totalorder %s1858_s17, %s2101_s2 }
  0x79   : > { %p1458_p4 = pnand %p1456_p7, %p2145_p9  ;;  %p1462_p8 = scmp.lt.u32.totalorder %s1460_s23, %s1455_s26 }
  0x7a   : > { %p1464_p1 = scmp.lt.u32.totalorder %s1455_s26, %s1858_s17 }
  0x7b   : > { %p1459_p6 = pneg %p1458_p4  ;;  %p1463_p12 = por %p1462_p8, %p1461_p3 }
  0x7d   : > { %p1465_p2 = por %p1464_p1, %p1463_p12 }
  0x7f   : > { %p1466_p13 = pnand %p1465_p2, %p1459_p6 }
  0x81   : > { %1469 = shalt.err (!%p1466_p13)
}
  0x82   : > { %s1470_s30 = scalar_lea.vmem %s1861_s16, 2048  ;;  %s1614_s0 = smov [#allocation7]  }
  0x83   : > { %p1471_p11 = scmp.ne.s32.totalorder %s1861_s16, %s1470_s30  ;;  %s1475_s20 = sshll.u32 %s1614_s0, 4  ;;  %s1476_s20 = int_to_ptr.vmem [resolvable:$false] %s1475_s20 }
  0x84   : > { %s1477_s27 = scalar_lea.vmem %s1476_s20, 4096  ;;  %p1478_p10 = scmp.lt.s32.totalorder %s1861_s16, %s1476_s20 }
  0x85   : > { %p1473_p0 = pnand %p1471_p11, %p2145_p9  ;;  %p1479_p7 = scmp.lt.s32.totalorder %s1477_s27, %s1470_s30 }
  0x87   : > { %p1474_p5 = pneg %p1473_p0  ;;  %p1480_p4 = por %p1479_p7, %p1478_p10 }
  0x89   : > { %p1481_p3 = pnand %p1480_p4, %p1474_p5 }
  0x8b   : > { %1484 = shalt.err (!%p1481_p3)
}
  0x8c   : > { %p2146_p6 = scmp.ne.s32.totalorder %s2131_s6, 0  ;;  %p2147_p9 = scmp.ne.s32.totalorder %s2138_s7, 0 }
  0x8d   : > { %s1891_s15 = sand.u32 (!%p2147_p9), 1, %s1591_s19   ;;  %p2148_p8 = scmp.ne.s32.totalorder (!%p2147_p9), %s2134_s8, 0 }
  0x8e   : > { %1302 = dma.hbm_to_vmem [thread:$0]  (!%p2146_p6), %s1858_s17, 2048, %s1861_s16, %s1718_s13, %s2143_s29, %s2143_s29, %s2142_s22  }
  0x8f   : > { %299 = sbr.rel (%p2147_p9) target bundleno = 471 (0x1d7), region = 36  ;;  %s1894_s14 = sshll.u32 (!%p2147_p9), %s1891_s15, 7 }
  0x90   : > { %s302_s6 = scalar_lea.sflag (!%p2147_p9), [#allocation3], %s1891_s15  ;;  %s1898_s1 = scalar_lea.vmem (!%p2147_p9), [#allocation2], %s1894_s14 }
  0x96   : > { %1566 = dma.done.wait (%p2148_p8), %s302_s6, 2048  }
  0x97   : > { %1568 = vsyncadd (%p2148_p8), %s302_s6, 4294965248  ;;  %s310_s13 = sand.u32 1, %s1752_s25   ;;  %s1906_s22 = scalar_lea.vmem [#allocation5], %s1894_s14 }
  0x98   : > { %s311_s7 = scalar_lea.sflag [#allocation6], %s310_s13 }
  0x99   : > { %1570 = dma.done.wait (%p2148_p8), %s311_s7, 4096  }
  0x9a   : > { %1572 = vsyncadd (%p2148_p8), %s311_s7, 4294963200  ;;  %s1913_s29 = scalar_lea.vmem [#allocation7], %s1894_s14  ;;  %p2149_p12 = scmp.eq.s32.totalorder %s1752_s25, 0 }
  0x9c   : > { %1574 = dma.done.wait (%p2149_p12), [#allocation9], 2048   ;;  %p2150_p1 = pmov %p2149_p12 }
  0x9d   : > { %v454_v0 = vld [vmem:[#allocation8] sm:$0xff]  ;;  %v455_v1 = vld [vmem:[#allocation8 + $0x8] sm:$0xff]  ;;  %v456_v2 = vld [vmem:[#allocation8 + $0x10] sm:$0xff]  ;;  %s1968_s25 = scalar_lea.vmem [#allocation11], %s1894_s14  ;;  %s1972_s8 = scalar_lea.vmem [#allocation10], %s1894_s14 }
  0x9e   : > { %1576 = vsyncadd (%p2150_p1), [#allocation9], 4294965248  ;;  %v1211_v3 = vpack.c.bf16 %v455_v1, %v454_v0  ;;  %v457_v4 = vld [vmem:[#allocation8 + $0x18] sm:$0xff]  ;;  %v458_v6 = vld [vmem:[#allocation8 + $0x20] sm:$0xff]  ;;  %s1033_s17 = sshll.u32 %s1599_s21, 11  ;;  %s812_s16 = sshll.u32 %s1972_s8, 4  ;;  %s2009_s16 = int_to_ptr.vmem [resolvable:$true] %s812_s16 }
  0x9f   : > { %v1215_v5 = vpack.c.bf16 %v457_v4, %v456_v2  ;;  %v459_v7 = vld [vmem:[#allocation8 + $0x28] sm:$0xff]  ;;  %v422_v9 = vld [vmem:[%s1913_s29] sm:$0xff]  ;;  %v460_v11 = vld [vmem:[#allocation8 + $0x30] sm:$0xff]  ;;  %s2006_s11 = scalar_lea.hbm %s2103_s4, %s1033_s17  ;;  %s829_s21 = sshll.u32 %s1968_s25, 4  ;;  %s2018_s21 = int_to_ptr.vmem [resolvable:$true] %s829_s21 }
  0xa0   : > { %1212 = vmatprep.subr.bf16.mxu0 %v1211_v3  ;;  %1244 = vmatprep.subr.bf16.mxu1 %v1211_v3  ;;  %v1219_v8 = vpack.c.bf16 %v459_v7, %v458_v6  ;;  %v374_v10 = vld [vmem:[%s1898_s1] sm:$0xff]  ;;  %v461_v12 = vld [vmem:[#allocation8 + $0x38] sm:$0xff]  ;;  %v463_v18 = vld [vmem:[#allocation8 + $0x48] sm:$0xff]  ;;  %s2016_s28 = scalar_lea.hbm %s2104_s5, %s1033_s17  ;;  %s793_s30 = scalar_lea.sflag [#allocation4], %s1891_s15 }
  0xa1   : > { %1214 = vmatpush3.bf16.msra.mxu0 %v1211_v3  ;;  %1246 = vmatpush3.bf16.msra.mxu1 %v1211_v3  ;;  %v390_v13 = vld [vmem:[%s1906_s22] sm:$0xff]  ;;  %v1223_v15 = vpack.c.bf16 %v461_v12, %v460_v11  ;;  %v464_v20 = vld [vmem:[#allocation8 + $0x50] sm:$0xff]  ;;  %v465_v21 = vld [vmem:[#allocation8 + $0x58] sm:$0xff]  ;;  %s1485_s0 = scalar_lea.vmem %s2009_s16, 2048  ;;  %p2151_p13 = scmp.ne.s32.totalorder %s2136_s10, 0 }
  0xa2   : > { %1216 = vmatprep.subr.bf16.mxu0 %v1215_v5  ;;  %1248 = vmatprep.subr.bf16.mxu1 %v1215_v5  ;;  %v406_v14 = vadd.f32 %v390_v13, %v374_v10  ;;  %v462_v17 = vld [vmem:[#allocation8 + $0x40] sm:$0xff]  ;;  %v1231_v22 = vpack.c.bf16 %v465_v21, %v464_v20  ;;  %v467_v24 = vld [vmem:[#allocation8 + $0x68] sm:$0xff]  ;;  %v468_v26 = vld [vmem:[#allocation8 + $0x70] sm:$0xff]  ;;  %p1486_p2 = scmp.ne.s32.totalorder %s2009_s16, %s1485_s0  ;;  %s1615_s20 = smov [#allocation10]  }
  0xa3   : > { %1131 = vmatprep.mubr.f32.mxu0 %v422_v9  ;;  %v1227_v19 = vpack.c.bf16 %v463_v18, %v462_v17  ;;  %v466_v23 = vld [vmem:[#allocation8 + $0x60] sm:$0xff]  ;;  %v469_v27 = vld [vmem:[#allocation8 + $0x78] sm:$0xff]  ;;  %v375_v28 = vld [vmem:[%s1898_s1 + $0x8] sm:$0xff]  ;;  %s1489_s27 = sshll.u32 %s1615_s20, 4  ;;  %s1490_s27 = int_to_ptr.vmem [resolvable:$false] %s1489_s27 }
  0xa4   : > { %v438_v16 = vadd.f32 %v422_v9, %v406_v14  ;;  %v1235_v25 = vpack.c.bf16 %v467_v24, %v466_v23  ;;  %v391_v29 = vld [vmem:[%s1906_s22 + $0x8] sm:$0xff]  ;;  %v1239_v30 = vpack.c.bf16 %v469_v27, %v468_v26  ;;  %v376_v31 = vld [vmem:[%s1898_s1 + $0x10] sm:$0xff]  ;;  %v377_v36 = vld [vmem:[%s1898_s1 + $0x18] sm:$0xff]  ;;  %p1487_p11 = pnand %p1486_p2, %p2151_p13  ;;  %s1491_s14 = scalar_lea.vmem %s1490_s27, 4096 }
  0xa5   : > { %1218 = vmatpush3.bf16.msra.mxu0 %v1215_v5  ;;  %1250 = vmatpush3.bf16.msra.mxu1 %v1215_v5  ;;  %v392_v32 = vld [vmem:[%s1906_s22 + $0x10] sm:$0xff]  ;;  %v407_v33 = vadd.f32 %v391_v29, %v375_v28  ;;  %v423_v34 = vld [vmem:[%s1913_s29 + $0x8] sm:$0xff]  ;;  %v393_v37 = vld [vmem:[%s1906_s22 + $0x18] sm:$0xff]  ;;  %p1492_p5 = scmp.lt.s32.totalorder %s2009_s16, %s1490_s27  ;;  %p1493_p10 = scmp.lt.s32.totalorder %s1491_s14, %s1485_s0 }
  0xa6   : > { %1220 = vmatprep.subr.bf16.mxu0 %v1219_v8  ;;  %1252 = vmatprep.subr.bf16.mxu1 %v1219_v8  ;;  %v408_v35 = vadd.f32 %v392_v32, %v376_v31  ;;  %v424_v38 = vld [vmem:[%s1913_s29 + $0x10] sm:$0xff]  ;;  %v378_v39 = vld [vmem:[%s1898_s1 + $0x20] sm:$0xff]  ;;  %v409_v42 = vadd.f32 %v393_v37, %v377_v36  ;;  %v425_v44 = vld [vmem:[%s1913_s29 + $0x18] sm:$0xff]  ;;  %p1488_p0 = pneg %p1487_p11 }
  0xa7   : > { %1187 = vmatprep.mubr.f32.mxu1 %v438_v16  ;;  %v394_v40 = vld [vmem:[%s1906_s22 + $0x20] sm:$0xff]  ;;  %v439_v41 = vadd.f32 %v423_v34, %v407_v33  ;;  %v379_v46 = vld [vmem:[%s1898_s1 + $0x28] sm:$0xff]  ;;  %v380_v49 = vld [vmem:[%s1898_s1 + $0x30] sm:$0xff]  ;;  %p1494_p7 = por %p1493_p10, %p1492_p5 }
  0xa8   : > { %v440_v43 = vadd.f32 %v424_v38, %v408_v35  ;;  %v410_v45 = vadd.f32 %v394_v40, %v378_v39  ;;  %v395_v47 = vld [vmem:[%s1906_s22 + $0x28] sm:$0xff]  ;;  %v426_v48 = vld [vmem:[%s1913_s29 + $0x20] sm:$0xff]  ;;  %v396_v50 = vld [vmem:[%s1906_s22 + $0x30] sm:$0xff]  ;;  %v441_v51 = vadd.f32 %v425_v44, %v409_v42 }
  0xa9   : > { %1222 = vmatpush3.bf16.msra.mxu0 %v1219_v8  ;;  %1254 = vmatpush3.bf16.msra.mxu1 %v1219_v8  ;;  %v411_v52 = vadd.f32 %v395_v47, %v379_v46  ;;  %v427_v54 = vld [vmem:[%s1913_s29 + $0x28] sm:$0xff]  ;;  %v412_v55 = vadd.f32 %v396_v50, %v380_v49  ;;  %v381_v56 = vld [vmem:[%s1898_s1 + $0x38] sm:$0xff]  ;;  %v428_v58 = vld [vmem:[%s1913_s29 + $0x30] sm:$0xff]  ;;  %p1495_p4 = pnand %p1494_p7, %p1488_p0 }
  0xaa   : > { %1224 = vmatprep.subr.bf16.mxu0 %v1223_v15  ;;  %1256 = vmatprep.subr.bf16.mxu1 %v1223_v15  ;;  %v442_v53 = vadd.f32 %v426_v48, %v410_v45  ;;  %v397_v57 = vld [vmem:[%s1906_s22 + $0x38] sm:$0xff]  ;;  %v382_v59 = vld [vmem:[%s1898_s1 + $0x40] sm:$0xff]  ;;  %v383_v2 = vld [vmem:[%s1898_s1 + $0x48] sm:$0xff] }
  0xab   : > { %v398_v60 = vld [vmem:[%s1906_s22 + $0x40] sm:$0xff]  ;;  %v443_v61 = vadd.f32 %v427_v54, %v411_v52  ;;  %v413_v62 = vadd.f32 %v397_v57, %v381_v56  ;;  %v444_v63 = vadd.f32 %v428_v58, %v412_v55  ;;  %v429_v0 = vld [vmem:[%s1913_s29 + $0x38] sm:$0xff]  ;;  %v399_v3 = vld [vmem:[%s1906_s22 + $0x48] sm:$0xff] }
  0xac   : > { %v414_v1 = vadd.f32 %v398_v60, %v382_v59  ;;  %v430_v4 = vld [vmem:[%s1913_s29 + $0x40] sm:$0xff]  ;;  %v384_v5 = vld [vmem:[%s1898_s1 + $0x50] sm:$0xff]  ;;  %v415_v8 = vadd.f32 %v399_v3, %v383_v2  ;;  %v431_v10 = vld [vmem:[%s1913_s29 + $0x48] sm:$0xff] }
  0xad   : > { %1226 = vmatpush3.bf16.msra.mxu0 %v1223_v15  ;;  %1258 = vmatpush3.bf16.msra.mxu1 %v1223_v15  ;;  %v400_v6 = vld [vmem:[%s1906_s22 + $0x50] sm:$0xff]  ;;  %v445_v7 = vadd.f32 %v429_v0, %v413_v62  ;;  %v385_v12 = vld [vmem:[%s1898_s1 + $0x58] sm:$0xff]  ;;  %v386_v15 = vld [vmem:[%s1898_s1 + $0x60] sm:$0xff] }
  0xae   : > { %1228 = vmatprep.subr.bf16.mxu0 %v1227_v19  ;;  %1260 = vmatprep.subr.bf16.mxu1 %v1227_v19  ;;  %v446_v9 = vadd.f32 %v430_v4, %v414_v1  ;;  %v416_v11 = vadd.f32 %v400_v6, %v384_v5  ;;  %v401_v13 = vld [vmem:[%s1906_s22 + $0x58] sm:$0xff]  ;;  %v432_v14 = vld [vmem:[%s1913_s29 + $0x50] sm:$0xff]  ;;  %v402_v16 = vld [vmem:[%s1906_s22 + $0x60] sm:$0xff]  ;;  %v447_v17 = vadd.f32 %v431_v10, %v415_v8 }
  0xaf   : > { %v417_v18 = vadd.f32 %v401_v13, %v385_v12  ;;  %v433_v20 = vld [vmem:[%s1913_s29 + $0x58] sm:$0xff]  ;;  %v418_v21 = vadd.f32 %v402_v16, %v386_v15  ;;  %v403_v23 = vld [vmem:[%s1906_s22 + $0x68] sm:$0xff]  ;;  %v434_v24 = vld [vmem:[%s1913_s29 + $0x60] sm:$0xff] }
  0xb0   : > { %v404_v26 = vld [vmem:[%s1906_s22 + $0x70] sm:$0xff]  ;;  %v389_v32 = vld [vmem:[%s1898_s1 + $0x78] sm:$0xff] }
  0xb1   : > { %1230 = vmatpush3.bf16.msra.mxu0 %v1227_v19  ;;  %1262 = vmatpush3.bf16.msra.mxu1 %v1227_v19  ;;  %v448_v19 = vadd.f32 %v432_v14, %v416_v11  ;;  %v449_v27 = vadd.f32 %v433_v20, %v417_v18  ;;  %v450_v29 = vadd.f32 %v434_v24, %v418_v21  ;;  %v405_v33 = vld [vmem:[%s1906_s22 + $0x78] sm:$0xff] }
  0xb2   : > { %1232 = vmatprep.subr.bf16.mxu0 %v1231_v22  ;;  %1264 = vmatprep.subr.bf16.mxu1 %v1231_v22  ;;  %v421_v36 = vadd.f32 %v405_v33, %v389_v32 }
  0xb5   : > { %1234 = vmatpush3.bf16.msra.mxu0 %v1231_v22  ;;  %1266 = vmatpush3.bf16.msra.mxu1 %v1231_v22  ;;  %v387_v22 = vld [vmem:[%s1898_s1 + $0x68] sm:$0xff] }
  0xb6   : > { %1236 = vmatprep.subr.bf16.mxu0 %v1235_v25  ;;  %1268 = vmatprep.subr.bf16.mxu1 %v1235_v25  ;;  %v419_v28 = vadd.f32 %v403_v23, %v387_v22 }
  0xb9   : > { %1238 = vmatpush3.bf16.msra.mxu0 %v1235_v25  ;;  %1270 = vmatpush3.bf16.msra.mxu1 %v1235_v25  ;;  %v388_v25 = vld [vmem:[%s1898_s1 + $0x70] sm:$0xff] }
  0xba   : > { %1240 = vmatprep.subr.bf16.mxu0 %v1239_v30  ;;  %1272 = vmatprep.subr.bf16.mxu1 %v1239_v30  ;;  %v420_v31 = vadd.f32 %v404_v26, %v388_v25 }
  0xbd   : > { %1242 = vmatpush3.bf16.msra.mxu0 %v1239_v30  ;;  %1274 = vmatpush3.bf16.msra.mxu1 %v1239_v30  ;;  %v435_v30 = vld [vmem:[%s1913_s29 + $0x68] sm:$0xff] }
  0xbe   : > { %v451_v35 = vadd.f32 %v435_v30, %v419_v28 }
  0xc0   : > { %1132 = vmatmul.mubr.f32.vlgmr.msra.gmra.mrb[0].mxu0 %v423_v34  ;;  %1188 = vmatmul.mubr.f32.vlgmr.msra.gmra.mrb[0].mxu1 %v439_v41  ;;  %v436_v34 = vld [vmem:[%s1913_s29 + $0x70] sm:$0xff] }
  0xc1   : > { %1134 = vmatprep.mubr.f32.mxu0 %v424_v38  ;;  %1190 = vmatprep.mubr.f32.mxu1 %v440_v43  ;;  %v452_v37 = vadd.f32 %v436_v34, %v420_v31  ;;  %v437_v38 = vld [vmem:[%s1913_s29 + $0x78] sm:$0xff] }
  0xc2   : > { %v453_v39 = vadd.f32 %v437_v38, %v421_v36 }
  0xc4   : > { %1135 = vmatmul.mubr.f32.gmra.mrb[2].mxu0 %v425_v44  ;;  %1191 = vmatmul.mubr.f32.gmra.mrb[2].mxu1 %v441_v51 }
  0xc5   : > { %1137 = vmatprep.mubr.f32.mxu0 %v426_v48  ;;  %1193 = vmatprep.mubr.f32.mxu1 %v442_v53 }
  0xc8   : > { %1138 = vmatmul.mubr.f32.gmra.mrb[4].mxu0 %v427_v54  ;;  %1194 = vmatmul.mubr.f32.gmra.mrb[4].mxu1 %v443_v61 }
  0xc9   : > { %1140 = vmatprep.mubr.f32.mxu0 %v428_v58  ;;  %1196 = vmatprep.mubr.f32.mxu1 %v444_v63 }
  0xcc   : > { %1141 = vmatmul.mubr.f32.gmra.mrb[6].mxu0 %v429_v0  ;;  %1197 = vmatmul.mubr.f32.gmra.mrb[6].mxu1 %v445_v7 }
  0xcd   : > { %1143 = vmatprep.mubr.f32.mxu0 %v430_v4  ;;  %1199 = vmatprep.mubr.f32.mxu1 %v446_v9 }
  0xd0   : > { %1144 = vmatmul.mubr.f32.gmra.mrb[8].mxu0 %v431_v10  ;;  %1200 = vmatmul.mubr.f32.gmra.mrb[8].mxu1 %v447_v17 }
  0xd1   : > { %1146 = vmatprep.mubr.f32.mxu0 %v432_v14  ;;  %1202 = vmatprep.mubr.f32.mxu1 %v448_v19 }
  0xd4   : > { %1147 = vmatmul.mubr.f32.gmra.mrb[10].mxu0 %v433_v20  ;;  %1203 = vmatmul.mubr.f32.gmra.mrb[10].mxu1 %v449_v27 }
  0xd5   : > { %1149 = vmatprep.mubr.f32.mxu0 %v434_v24  ;;  %1205 = vmatprep.mubr.f32.mxu1 %v450_v29 }
  0xd8   : > { %1150 = vmatmul.mubr.f32.gmra.mrb[12].mxu0 %v435_v30  ;;  %1206 = vmatmul.mubr.f32.gmra.mrb[12].mxu1 %v451_v35 }
  0xd9   : > { %1152 = vmatprep.mubr.f32.mxu0 %v436_v34  ;;  %1208 = vmatprep.mubr.f32.mxu1 %v452_v37 }
  0xdc   : > { %1153 = vmatmul.mubr.f32.gmra.mrb[14].mxu0 %v437_v38  ;;  %1209 = vmatmul.mubr.f32.gmra.mrb[14].mxu1 %v453_v39 }
 0x193   : > { %v1133_v40 = vpop.f32.mrb[0].mxu0  ;;  %v1189_v41 = vpop.f32.mrb[0].mxu1 }
 0x194   : > { %777 = vst [vmem:[%s1968_s25 + $0x8] sm:$0xff] %v1133_v40  ;;  %761 = vst [vmem:[%s1972_s8 + $0x8] sm:$0xff] %v1189_v41  ;;  %v536_v42 = vpop.f32.mrb[1].mxu0  ;;  %v681_v43 = vpop.f32.mrb[1].mxu1 }
 0x195   : > { %776 = vst [vmem:[%s1968_s25] sm:$0xff] %v536_v42  ;;  %760 = vst [vmem:[%s1972_s8] sm:$0xff] %v681_v43 }
 0x197   : > { %v1136_v44 = vpop.f32.mrb[2].mxu0  ;;  %v1192_v45 = vpop.f32.mrb[2].mxu1 }
 0x198   : > { %779 = vst [vmem:[%s1968_s25 + $0x18] sm:$0xff] %v1136_v44  ;;  %763 = vst [vmem:[%s1972_s8 + $0x18] sm:$0xff] %v1192_v45  ;;  %v546_v46 = vpop.f32.mrb[3].mxu0  ;;  %v691_v47 = vpop.f32.mrb[3].mxu1 }
 0x199   : > { %778 = vst [vmem:[%s1968_s25 + $0x10] sm:$0xff] %v546_v46  ;;  %762 = vst [vmem:[%s1972_s8 + $0x10] sm:$0xff] %v691_v47 }
 0x19b   : > { %v1139_v48 = vpop.f32.mrb[4].mxu0  ;;  %v1195_v49 = vpop.f32.mrb[4].mxu1 }
 0x19c   : > { %781 = vst [vmem:[%s1968_s25 + $0x28] sm:$0xff] %v1139_v48  ;;  %765 = vst [vmem:[%s1972_s8 + $0x28] sm:$0xff] %v1195_v49  ;;  %v556_v50 = vpop.f32.mrb[5].mxu0  ;;  %v701_v51 = vpop.f32.mrb[5].mxu1 }
 0x19d   : > { %780 = vst [vmem:[%s1968_s25 + $0x20] sm:$0xff] %v556_v50  ;;  %764 = vst [vmem:[%s1972_s8 + $0x20] sm:$0xff] %v701_v51 }
 0x19f   : > { %v1142_v52 = vpop.f32.mrb[6].mxu0  ;;  %v1198_v53 = vpop.f32.mrb[6].mxu1 }
 0x1a0   : > { %783 = vst [vmem:[%s1968_s25 + $0x38] sm:$0xff] %v1142_v52  ;;  %767 = vst [vmem:[%s1972_s8 + $0x38] sm:$0xff] %v1198_v53  ;;  %v566_v54 = vpop.f32.mrb[7].mxu0  ;;  %v711_v55 = vpop.f32.mrb[7].mxu1 }
 0x1a1   : > { %782 = vst [vmem:[%s1968_s25 + $0x30] sm:$0xff] %v566_v54  ;;  %766 = vst [vmem:[%s1972_s8 + $0x30] sm:$0xff] %v711_v55 }
 0x1a3   : > { %v1145_v56 = vpop.f32.mrb[8].mxu0  ;;  %v1201_v57 = vpop.f32.mrb[8].mxu1 }
 0x1a4   : > { %785 = vst [vmem:[%s1968_s25 + $0x48] sm:$0xff] %v1145_v56  ;;  %769 = vst [vmem:[%s1972_s8 + $0x48] sm:$0xff] %v1201_v57  ;;  %v576_v58 = vpop.f32.mrb[9].mxu0  ;;  %v721_v59 = vpop.f32.mrb[9].mxu1 }
 0x1a5   : > { %784 = vst [vmem:[%s1968_s25 + $0x40] sm:$0xff] %v576_v58  ;;  %768 = vst [vmem:[%s1972_s8 + $0x40] sm:$0xff] %v721_v59 }
 0x1a7   : > { %v1148_v60 = vpop.f32.mrb[10].mxu0  ;;  %v1204_v61 = vpop.f32.mrb[10].mxu1 }
 0x1a8   : > { %787 = vst [vmem:[%s1968_s25 + $0x58] sm:$0xff] %v1148_v60  ;;  %771 = vst [vmem:[%s1972_s8 + $0x58] sm:$0xff] %v1204_v61  ;;  %v586_v62 = vpop.f32.mrb[11].mxu0  ;;  %v731_v63 = vpop.f32.mrb[11].mxu1 }
 0x1a9   : > { %786 = vst [vmem:[%s1968_s25 + $0x50] sm:$0xff] %v586_v62  ;;  %770 = vst [vmem:[%s1972_s8 + $0x50] sm:$0xff] %v731_v63 }
 0x1ab   : > { %v1151_v0 = vpop.f32.mrb[12].mxu0  ;;  %v1207_v1 = vpop.f32.mrb[12].mxu1 }
 0x1ac   : > { %789 = vst [vmem:[%s1968_s25 + $0x68] sm:$0xff] %v1151_v0  ;;  %773 = vst [vmem:[%s1972_s8 + $0x68] sm:$0xff] %v1207_v1  ;;  %v596_v2 = vpop.f32.mrb[13].mxu0  ;;  %v741_v3 = vpop.f32.mrb[13].mxu1 }
 0x1ad   : > { %788 = vst [vmem:[%s1968_s25 + $0x60] sm:$0xff] %v596_v2  ;;  %772 = vst [vmem:[%s1972_s8 + $0x60] sm:$0xff] %v741_v3 }
 0x1af   : > { %v1154_v4 = vpop.f32.mrb[14].mxu0  ;;  %v1210_v5 = vpop.f32.mrb[14].mxu1 }
 0x1b0   : > { %791 = vst [vmem:[%s1968_s25 + $0x78] sm:$0xff] %v1154_v4  ;;  %775 = vst [vmem:[%s1972_s8 + $0x78] sm:$0xff] %v1210_v5  ;;  %v606_v6 = vpop.f32.mrb[15].mxu0  ;;  %v751_v7 = vpop.f32.mrb[15].mxu1 }
 0x1b1   : > { %790 = vst [vmem:[%s1968_s25 + $0x70] sm:$0xff] %v606_v6  ;;  %774 = vst [vmem:[%s1972_s8 + $0x70] sm:$0xff] %v751_v7 }
 0x1b2   : > { %1498 = shalt.err (!%p1495_p4)
}
 0x1b3   : > { %s1499_s6 = scalar_lea.hbm %s2006_s11, 2048  ;;  %s1503_s7 = scalar_lea.hbm %s2103_s4, 4096 }
 0x1b4   : > { %p1500_p3 = scmp.ne.s32.totalorder %s2006_s11, %s1499_s6  ;;  %p1504_p8 = scmp.lt.u32.totalorder %s2006_s11, %s2103_s4 }
 0x1b5   : > { %p1505_p12 = scmp.lt.u32.totalorder %s1503_s7, %s1499_s6  ;;  %p1507_p2 = scmp.lt.u32.totalorder %s1499_s6, %s2006_s11 }
 0x1b6   : > { %p1501_p6 = pnand %p1500_p3, %p2151_p13 }
 0x1b7   : > { %p1506_p1 = por %p1505_p12, %p1504_p8 }
 0x1b8   : > { %p1502_p9 = pneg %p1501_p6 }
 0x1b9   : > { %p1508_p11 = por %p1507_p2, %p1506_p1 }
 0x1bb   : > { %p1509_p0 = pnand %p1508_p11, %p1502_p9 }
 0x1bd   : > { %1512 = shalt.err (!%p1509_p0)
}
 0x1be   : > { %s1616_s25 = smov 128   ;;  %s1617_s8 = smov 8  }
 0x1bf   : > { %1285 = dma.vmem_to_hbm [thread:$0]  (%p2151_p13), %s2009_s16, 2048, %s2006_s11, %s793_s30, %s1616_s25, %s1616_s25, %s1617_s8  }
 0x1c0   : > { %s798_s17 = scalar_lea.sflag [#allocation12], %s1891_s15  ;;  %s1513_s26 = scalar_lea.vmem %s2018_s21, 2048 }
 0x1c1   : > { %p1514_p5 = scmp.ne.s32.totalorder %s2018_s21, %s1513_s26  ;;  %s1618_s9 = smov [#allocation11]  }
 0x1c2   : > { %s1517_s23 = sshll.u32 %s1618_s9, 4  ;;  %s1518_s23 = int_to_ptr.vmem [resolvable:$false] %s1517_s23 }
 0x1c3   : > { %p1515_p10 = pnand %p1514_p5, %p2151_p13  ;;  %s1519_s24 = scalar_lea.vmem %s1518_s23, 4096 }
 0x1c4   : > { %p1520_p4 = scmp.lt.s32.totalorder %s2018_s21, %s1518_s23  ;;  %p1521_p3 = scmp.lt.s32.totalorder %s1519_s24, %s1513_s26 }
 0x1c5   : > { %p1516_p7 = pneg %p1515_p10 }
 0x1c6   : > { %p1522_p6 = por %p1521_p3, %p1520_p4 }
 0x1c8   : > { %p1523_p9 = pnand %p1522_p6, %p1516_p7 }
 0x1ca   : > { %1526 = shalt.err (!%p1523_p9)
}
 0x1cb   : > { %s1527_s16 = scalar_lea.hbm %s2016_s28, 2048  ;;  %s1531_s0 = scalar_lea.hbm %s2104_s5, 4096 }
 0x1cc   : > { %p1528_p8 = scmp.ne.s32.totalorder %s2016_s28, %s1527_s16  ;;  %p1532_p2 = scmp.lt.u32.totalorder %s2016_s28, %s2104_s5 }
 0x1cd   : > { %p1533_p11 = scmp.lt.u32.totalorder %s1531_s0, %s1527_s16  ;;  %p1535_p5 = scmp.lt.u32.totalorder %s1527_s16, %s2016_s28 }
 0x1ce   : > { %p1529_p12 = pnand %p1528_p8, %p2151_p13 }
 0x1cf   : > { %p1534_p0 = por %p1533_p11, %p1532_p2 }
 0x1d0   : > { %p1530_p1 = pneg %p1529_p12 }
 0x1d1   : > { %p1536_p10 = por %p1535_p5, %p1534_p0 }
 0x1d3   : > { %p1537_p7 = pnand %p1536_p10, %p1530_p1 }
 0x1d5   : > { %1540 = shalt.err (!%p1537_p7)
}
 0x1d6   : > { %1286 = dma.vmem_to_hbm [thread:$0]  (%p2151_p13), %s2018_s21, 2048, %s2016_s28, %s798_s17, %s1616_s25, %s1616_s25, %s1617_s8  }
 0x1d7 PF: > { %s2152_s14 = sld [smem:[#allocation20_spill]]  ;;  %s844_s6 = sand.u32 1, %s1587_s18  }
 0x1d8   : > { %p2153_p4 = scmp.ne.s32.totalorder %s2137_s12, 0  ;;  %s845_s1 = scalar_lea.sflag [#allocation4], %s844_s6 }
 0x1dd   : > { %p2154_p3 = scmp.ge.s32.totalorder %s2152_s14, 2 }
 0x1df   : > { %p1304_p6 = pnand %p2154_p3, %p2153_p4 }
 0x1e1   : > { %1578 = dma.done.wait (!%p1304_p6), %s845_s1, 2048  }
 0x1e2   : > { %1580 = vsyncadd (!%p1304_p6), %s845_s1, 4294965248  ;;  %s854_s10 = scalar_lea.sflag [#allocation12], %s844_s6 }
 0x1e3   : > { %1582 = dma.done.wait (!%p1304_p6), %s854_s10, 2048  }
 0x1e4   : > { %1584 = vsyncadd (!%p1304_p6), %s854_s10, 4294965248  ;;  %s29_s23 = sadd.s32 1, %s2152_s14   ;;  %s2155_s15 = sld [smem:[#allocation18_spill]] }
 0x1e5   : > { %p26_p9 = scmp.ge.s32.totalorder %s29_s23, 4   ;;  %s2156_s20 = sld [smem:[#allocation22_spill]] }
 0x1e6   : > { %s2157_s21 = sld [smem:[#allocation19_spill]]  ;;  %s2158_s22 = sld [smem:[#allocation21_spill]] }
 0x1e7   : > { %s2159_s18 = smov %s1591_s19  ;;  %28 = sbr.rel (!%p26_p9) target bundleno = 14 (0xe), region = 127 }
 0x1ea   : > { %s2160_s19 = smov %s2155_s15 }
 0x1ee   :  { %859 = vsyncpa [#allocation3], 1 }
 0x1ef   :  { %861 = vsyncpa [#allocation3 + $0x1], 1 }
 0x1f0   :  { %862 = vsyncpa [#allocation6], 1 }
 0x1f1   :  { %864 = vsyncpa [#allocation6 + $0x1], 1 }
 0x1f2   :  { %865 = vsyncpa [#allocation9], 1 }
 0x1f3   :  { %866 = vsyncpa [#allocation4], 1 }
 0x1f4   :  { %868 = vsyncpa [#allocation4 + $0x1], 1 }
 0x1f5   :  { %869 = vsyncpa [#allocation12], 1 }
 0x1f6   :  { %871 = vsyncpa [#allocation12 + $0x1], 1 }

</bundles_post_ra>
